<compile_context>
chip_gen: v7x
topology: tpu7x:2x2x1
jax: 0.10.0
libtpu: 0.0.40
codegen_flags: <defaults>
</compile_context>

<pallas_src>
import functools
import math

import jax
import jax.numpy as jnp
from jax import lax
from jax.experimental import pallas as pl
from jax.experimental.pallas import tpu as pltpu


def dan_kernel(x_ref, m_ref, wq_ref, wk_ref, wv_ref, b_in_ref, wo_ref, bo_ref,
               wl_ref, bl_ref, combined_ref, reps_ref, acc_ref, cnt_ref,
               *, num_layers, seq_len, t_block, embed_dim):
    D = embed_dim
    Tb = t_block
    step = pl.program_id(0)

    @pl.when(step == 0)
    def _init():
        acc_ref[...] = jnp.zeros_like(acc_ref)
        cnt_ref[...] = jnp.zeros_like(cnt_ref)

    x = x_ref[...].astype(jnp.float32)        # (Tb, B, D), token-major tile
    m = m_ref[...].astype(jnp.float32)        # (Tb, B, 1)
    B = x.shape[1]

    xm = x * m                                # zero out padding tokens

    # counts: nonzero entries per (b, d) over the token axis
    # (== torch.count_nonzero(masked_x, dim=1)); accumulated across tiles.
    cnt_ref[...] += jnp.sum((xm != 0.0).astype(jnp.float32), axis=0)

    # Batched Q/K/V projections for the whole token tile.  Weights arrive
    # pre-transposed (D, D), so no transposes are emitted in the hot region.
    xf = xm.reshape(Tb * B, D)
    qf = jnp.dot(xf, wq_ref[...], preferred_element_type=jnp.float32) + b_in_ref[0:1, :]
    kf = jnp.dot(xf, wk_ref[...], preferred_element_type=jnp.float32) + b_in_ref[1:2, :]
    vf = jnp.dot(xf, wv_ref[...], preferred_element_type=jnp.float32) + b_in_ref[2:3, :]
    q = qf.reshape(Tb, B, D)
    k = kf.reshape(Tb, B, D)
    v = vf.reshape(Tb, B, D)

    # Single-head attention in PyTorch's batch_first=False convention
    # ((L=B, N=T, E=D)): for each token t, attend across the batch axis.
    scale = 1.0 / math.sqrt(D)
    s = jnp.einsum('tbd,tcd->tbc', q, k,
                   preferred_element_type=jnp.float32) * scale      # (Tb, B, B)
    s = s - jnp.max(s, axis=-1, keepdims=True)
    p = jnp.exp(s)
    p = p * pl.reciprocal(jnp.sum(p, axis=-1, keepdims=True), approx=True)
    o = jnp.einsum('tbc,tcd->tbd', p, v,
                   preferred_element_type=jnp.float32)              # (Tb, B, D)

    # Accumulate sum_t O_t (pre-out_proj); out_proj is affine, so it is hoisted
    # out of the token reduction and applied once in the finalize step.
    acc_ref[...] += jnp.sum(o, axis=0)

    @pl.when(step == pl.num_programs(0) - 1)
    def _finalize():
        # sum_t (O_t @ Wo^T + bo) == (sum_t O_t) @ Wo^T + seq_len * bo
        h = (jnp.dot(acc_ref[...], wo_ref[...],
                     preferred_element_type=jnp.float32)
             + float(seq_len) * bo_ref[...])
        # Mean over tokens: divide by per-(b, d) nonzero counts, exactly like
        # torch.div.  Precondition (same as the reference module): counts > 0,
        # i.e. no fully-masked sequence / all-zero embedding dimension.
        h = h / cnt_ref[...]

        # DAN stack: Linear -> ReLU -> ... -> Linear; layer_representations are
        # the post-Linear (pre-ReLU) activations, written as a single slab.
        reps = []
        for i in range(num_layers):
            h = (jnp.dot(h, wl_ref[i], preferred_element_type=jnp.float32)
                 + bl_ref[i:i + 1, :])
            reps.append(h)
            if i < num_layers - 1:
                h = jnp.maximum(h, 0.0)
        combined_ref[...] = h
        reps_ref[...] = jnp.stack(reps, axis=0)

    # TODO(synk): training-mode paths (Bernoulli token dropout and attention
    # dropout) are stochastic and omitted; this kernel implements eval mode.


def dan_sequence_to_vector(x, mask, params, num_layers, t_block=None):
    B, T, D = x.shape
    if t_block is None:
        t_block = T
    assert T % t_block == 0, "t_block must divide the token length"
    grid = (T // t_block,)

    # Host-side layout prep (plain XLA, outside the kernel): put the token axis
    # first so it can be tiled by the grid, and pre-transpose every weight once.
    x_t = jnp.transpose(x.astype(jnp.float32), (1, 0, 2))               # (T, B, D)
    m_t = jnp.transpose(mask.astype(jnp.float32), (1, 0))[:, :, None]   # (T, B, 1)
    w_in = params["w_in"].astype(jnp.float32)
    wq_t = jnp.transpose(w_in[0:D])                                     # (D, D)
    wk_t = jnp.transpose(w_in[D:2 * D])
    wv_t = jnp.transpose(w_in[2 * D:3 * D])
    b_in = params["b_in"].astype(jnp.float32)                           # (3, D)
    wo_t = jnp.transpose(params["w_out"].astype(jnp.float32))           # (D, D)
    bo = params["b_out"].astype(jnp.float32)                            # (1, D)
    wl_t = jnp.transpose(params["w_layers"].astype(jnp.float32), (0, 2, 1))
    bl = params["b_layers"].astype(jnp.float32)                         # (L, D)

    kernel = functools.partial(dan_kernel, num_layers=num_layers, seq_len=T,
                               t_block=t_block, embed_dim=D)

    combined, reps = pl.pallas_call(
        kernel,
        out_shape=(jax.ShapeDtypeStruct((B, D), jnp.float32),
                   jax.ShapeDtypeStruct((num_layers, B, D), jnp.float32)),
        grid_spec=pltpu.PrefetchScalarGridSpec(
            num_scalar_prefetch=0,
            grid=grid,
            in_specs=[
                pl.BlockSpec((t_block, B, D), lambda t: (t, 0, 0)),       # x (token-major)
                pl.BlockSpec((t_block, B, 1), lambda t: (t, 0, 0)),       # mask
                pl.BlockSpec((D, D), lambda t: (0, 0)),                   # Wq^T
                pl.BlockSpec((D, D), lambda t: (0, 0)),                   # Wk^T
                pl.BlockSpec((D, D), lambda t: (0, 0)),                   # Wv^T
                pl.BlockSpec((3, D), lambda t: (0, 0)),                   # in-proj biases
                pl.BlockSpec((D, D), lambda t: (0, 0)),                   # Wo^T
                pl.BlockSpec((1, D), lambda t: (0, 0)),                   # bo
                pl.BlockSpec((num_layers, D, D), lambda t: (0, 0, 0)),    # DAN W^T stack
                pl.BlockSpec((num_layers, D), lambda t: (0, 0)),          # DAN biases
            ],
            out_specs=(
                pl.BlockSpec((B, D), lambda t: (0, 0)),
                pl.BlockSpec((num_layers, B, D), lambda t: (0, 0, 0)),
            ),
            scratch_shapes=[
                pltpu.VMEM((B, D), jnp.float32),   # sum_t O_t accumulator
                pltpu.VMEM((B, D), jnp.float32),   # nonzero-count accumulator
            ],
        ),
        compiler_params=pltpu.CompilerParams(
            dimension_semantics=("arbitrary",)),   # token axis is a reduction
    )(x_t, m_t, wq_t, wk_t, wv_t, b_in, wo_t, bo, wl_t, bl)
    return {"combined_vector": combined, "layer_representations": reps}


def init_params(key, input_dim, num_layers):
    D = input_dim
    k1, k2, k3, k4, k5, k6 = jax.random.split(key, 6)
    lim_attn = math.sqrt(6.0 / (D + D))          # xavier-uniform-ish
    lim_lin = 1.0 / math.sqrt(D)                 # PyTorch Linear default range
    return {
        "w_in": jax.random.uniform(k1, (3 * D, D), jnp.float32, -lim_attn, lim_attn),
        "b_in": jax.random.uniform(k5, (3, D), jnp.float32, -0.2, 0.2),
        "w_out": jax.random.uniform(k2, (D, D), jnp.float32, -lim_attn, lim_attn),
        "b_out": jax.random.uniform(k6, (1, D), jnp.float32, -0.2, 0.2),
        "w_layers": jax.random.uniform(k3, (num_layers, D, D), jnp.float32,
                                       -lim_lin, lim_lin),
        "b_layers": jax.random.uniform(k4, (num_layers, D), jnp.float32,
                                       -lim_lin, lim_lin),
    }


def dan_reference(x, mask, params, num_layers):
    """Pure-JAX reference mirroring the PyTorch module in eval mode."""
    B, T, D = x.shape
    hp = lax.Precision.HIGHEST
    xm = x * mask[:, :, None]
    counts = jnp.sum((xm != 0.0).astype(jnp.float32), axis=1)
    w_in, b_in = params["w_in"], params["b_in"]
    q = jnp.einsum('btd,ed->bte', xm, w_in[0:D], precision=hp) + b_in[0]
    k = jnp.einsum('btd,ed->bte', xm, w_in[D:2 * D], precision=hp) + b_in[1]
    v = jnp.einsum('btd,ed->bte', xm, w_in[2 * D:], precision=hp) + b_in[2]
    s = jnp.einsum('btd,ctd->tbc', q, k, precision=hp) / math.sqrt(D)
    p = jax.nn.softmax(s, axis=-1)
    o = jnp.einsum('tbc,ctd->tbd', p, v, precision=hp)
    o = jnp.einsum('tbd,ed->tbe', o, params["w_out"], precision=hp) + params["b_out"][0]
    h = jnp.sum(o, axis=0) / counts
    reps = []
    for i in range(num_layers):
        h = jnp.dot(h, params["w_layers"][i].T, precision=hp) + params["b_layers"][i]
        reps.append(h)
        if i < num_layers - 1:
            h = jnp.maximum(h, 0.0)
    return {"combined_vector": h, "layer_representations": jnp.stack(reps, axis=0)}


if __name__ == "__main__":
    B, T, D = 2, 8, 32
    num_layers = 3

    key = jax.random.PRNGKey(0)
    kx, kp = jax.random.split(key)
    x = jax.random.normal(kx, (B, T, D), dtype=jnp.float32)
    # first sequence has 6 real tokens, second has all 8
    mask = jnp.array([[1, 1, 1, 1, 1, 1, 0, 0],
                      [1, 1, 1, 1, 1, 1, 1, 1]], dtype=jnp.float32)
    params = init_params(kp, D, num_layers)

    # t_block=4 -> grid of 2 steps, exercising the tiled reduction/accumulator path.
    out = dan_sequence_to_vector(x, mask, params, num_layers, t_block=4)
    jax.block_until_ready(out)

    assert out["combined_vector"].shape == (B, D)
    assert out["layer_representations"].shape == (num_layers, B, D)

    ref = dan_reference(x, mask, params, num_layers)
    for name in ("combined_vector", "layer_representations"):
        err = float(jnp.max(jnp.abs(out[name] - ref[name])))
        assert err < 5e-2, (name, err)

    print("KERNEL_OK")
</pallas_src>

<mosaic_0001>
module attributes {stable_mosaic.version = 11 : i64} {
  func.func @dan_kernel(%arg0: i32, %arg1: memref<4x2x32xf32, #tpu.memory_space<vmem>>, %arg2: memref<4x2x1xf32, #tpu.memory_space<vmem>>, %arg3: memref<32x32xf32, #tpu.memory_space<vmem>>, %arg4: memref<32x32xf32, #tpu.memory_space<vmem>>, %arg5: memref<32x32xf32, #tpu.memory_space<vmem>>, %arg6: memref<3x32xf32, #tpu.memory_space<vmem>>, %arg7: memref<32x32xf32, #tpu.memory_space<vmem>>, %arg8: memref<1x32xf32, #tpu.memory_space<vmem>>, %arg9: memref<3x32x32xf32, #tpu.memory_space<vmem>>, %arg10: memref<3x32xf32, #tpu.memory_space<vmem>>, %arg11: memref<2x32xf32, #tpu.memory_space<vmem>>, %arg12: memref<3x2x32xf32, #tpu.memory_space<vmem>>, %arg13: memref<2x32xf32, #tpu.memory_space<vmem>>, %arg14: memref<2x32xf32, #tpu.memory_space<vmem>>) attributes {dimension_semantics = [#tpu.dimension_semantics<arbitrary>], iteration_bounds = array<i64: 2>, scalar_prefetch = 0 : i64, scratch_operands = 2 : i64, tpu.core_type = #tpu.core_type<tc>, window_params = [{transform_indices = @transform_0, window_bounds = array<i64: 4, 2, 32>}, {transform_indices = @transform_1, window_bounds = array<i64: 4, 2, 1>}, {pipeline_mode = #tpu.pipeline_mode<synchronous>, transform_indices = @transform_2, window_bounds = array<i64: 32, 32>}, {pipeline_mode = #tpu.pipeline_mode<synchronous>, transform_indices = @transform_3, window_bounds = array<i64: 32, 32>}, {pipeline_mode = #tpu.pipeline_mode<synchronous>, transform_indices = @transform_4, window_bounds = array<i64: 32, 32>}, {pipeline_mode = #tpu.pipeline_mode<synchronous>, transform_indices = @transform_5, window_bounds = array<i64: 3, 32>}, {pipeline_mode = #tpu.pipeline_mode<synchronous>, transform_indices = @transform_6, window_bounds = array<i64: 32, 32>}, {pipeline_mode = #tpu.pipeline_mode<synchronous>, transform_indices = @transform_7, window_bounds = array<i64: 1, 32>}, {pipeline_mode = #tpu.pipeline_mode<synchronous>, transform_indices = @transform_8, window_bounds = array<i64: 3, 32, 32>}, {pipeline_mode = #tpu.pipeline_mode<synchronous>, transform_indices = @transform_9, window_bounds = array<i64: 3, 32>}, {pipeline_mode = #tpu.pipeline_mode<synchronous>, transform_indices = @transform_10, window_bounds = array<i64: 2, 32>}, {pipeline_mode = #tpu.pipeline_mode<synchronous>, transform_indices = @transform_11, window_bounds = array<i64: 3, 2, 32>}]} {
    %c0_i32 = arith.constant 0 : i32
    %0 = arith.cmpi eq, %arg0, %c0_i32 : i32
    %1 = arith.extui %0 : i1 to i32
    %c0_i32_0 = arith.constant 0 : i32
    %2 = arith.cmpi ne, %1, %c0_i32_0 : i32
    scf.if %2 {
      %cst_35 = arith.constant 0.000000e+00 : f32
      %55 = vector.broadcast %cst_35 : f32 to vector<2x32xf32>
      %c0_36 = arith.constant 0 : index
      %c0_37 = arith.constant 0 : index
      %56 = vector.load %arg13[%c0_36, %c0_37] : memref<2x32xf32, #tpu.memory_space<vmem>>, vector<2x32xf32>
      tpu.vector_store %arg13[%c0_36, %c0_37], %55 {strides = array<i32>} : memref<2x32xf32, #tpu.memory_space<vmem>>, vector<2x32xf32>,
      %cst_38 = arith.constant 0.000000e+00 : f32
      %57 = vector.broadcast %cst_38 : f32 to vector<2x32xf32>
      %c0_39 = arith.constant 0 : index
      %c0_40 = arith.constant 0 : index
      %58 = vector.load %arg14[%c0_39, %c0_40] : memref<2x32xf32, #tpu.memory_space<vmem>>, vector<2x32xf32>
      tpu.vector_store %arg14[%c0_39, %c0_40], %57 {strides = array<i32>} : memref<2x32xf32, #tpu.memory_space<vmem>>, vector<2x32xf32>,
    } else {
    }
    %c0 = arith.constant 0 : index
    %c0_1 = arith.constant 0 : index
    %c0_2 = arith.constant 0 : index
    %3 = vector.load %arg1[%c0, %c0_1, %c0_2] : memref<4x2x32xf32, #tpu.memory_space<vmem>>, vector<4x2x32xf32>
    %c0_3 = arith.constant 0 : index
    %c0_4 = arith.constant 0 : index
    %c0_5 = arith.constant 0 : index
    %4 = vector.load %arg2[%c0_3, %c0_4, %c0_5] : memref<4x2x1xf32, #tpu.memory_space<vmem>>, vector<4x2x1xf32>
    %5 = vector.broadcast %4 : vector<4x2x1xf32> to vector<4x2x32xf32>
    %6 = arith.mulf %3, %5 : vector<4x2x32xf32>
    %c0_6 = arith.constant 0 : index
    %c0_7 = arith.constant 0 : index
    %7 = vector.load %arg14[%c0_6, %c0_7] : memref<2x32xf32, #tpu.memory_space<vmem>>, vector<2x32xf32>
    %cst = arith.constant 0.000000e+00 : f32
    %8 = vector.broadcast %cst : f32 to vector<4x2x32xf32>
    %9 = arith.cmpf one, %6, %8 : vector<4x2x32xf32>
    %10 = arith.extui %9 : vector<4x2x32xi1> to vector<4x2x32xi32>
    %11 = arith.sitofp %10 : vector<4x2x32xi32> to vector<4x2x32xf32>
    %cst_8 = arith.constant dense<0.000000e+00> : vector<2x32xf32>
    %12 = vector.multi_reduction <add>, %11, %cst_8 [0] : vector<4x2x32xf32> to vector<2x32xf32>
    %13 = arith.addf %7, %12 : vector<2x32xf32>
    %c0_9 = arith.constant 0 : index
    %c0_10 = arith.constant 0 : index
    %14 = vector.load %arg14[%c0_9, %c0_10] : memref<2x32xf32, #tpu.memory_space<vmem>>, vector<2x32xf32>
    tpu.vector_store %arg14[%c0_9, %c0_10], %13 {strides = array<i32>} : memref<2x32xf32, #tpu.memory_space<vmem>>, vector<2x32xf32>,
    %15 = vector.shape_cast %6 : vector<4x2x32xf32> to vector<8x32xf32>
    %c0_11 = arith.constant 0 : index
    %c0_12 = arith.constant 0 : index
    %16 = vector.load %arg3[%c0_11, %c0_12] : memref<32x32xf32, #tpu.memory_space<vmem>>, vector<32x32xf32>
    %cst_13 = arith.constant dense<0.000000e+00> : vector<8x32xf32>
    %17 = tpu.matmul %15, %16, %cst_13 {dimension_numbers = #tpu.dot_dimension_numbers<[1], [0], [0], [1], [0, 0, 1, 1], [], []>} : vector<8x32xf32>, vector<32x32xf32>, vector<8x32xf32> -> vector<8x32xf32>
    %c0_14 = arith.constant 0 : index
    %c0_15 = arith.constant 0 : index
    %18 = vector.load %arg6[%c0_14, %c0_15] : memref<3x32xf32, #tpu.memory_space<vmem>>, vector<1x32xf32>
    %19 = vector.broadcast %18 : vector<1x32xf32> to vector<8x32xf32>
    %20 = arith.addf %17, %19 : vector<8x32xf32>
    %c0_16 = arith.constant 0 : index
    %c0_17 = arith.constant 0 : index
    %21 = vector.load %arg4[%c0_16, %c0_17] : memref<32x32xf32, #tpu.memory_space<vmem>>, vector<32x32xf32>
    %cst_18 = arith.constant dense<0.000000e+00> : vector<8x32xf32>
    %22 = tpu.matmul %15, %21, %cst_18 {dimension_numbers = #tpu.dot_dimension_numbers<[1], [0], [0], [1], [0, 0, 1, 1], [], []>} : vector<8x32xf32>, vector<32x32xf32>, vector<8x32xf32> -> vector<8x32xf32>
    %c1 = arith.constant 1 : index
    %c0_19 = arith.constant 0 : index
    %23 = vector.load %arg6[%c1, %c0_19] : memref<3x32xf32, #tpu.memory_space<vmem>>, vector<1x32xf32>
    %24 = vector.broadcast %23 : vector<1x32xf32> to vector<8x32xf32>
    %25 = arith.addf %22, %24 : vector<8x32xf32>
    %c0_20 = arith.constant 0 : index
    %c0_21 = arith.constant 0 : index
    %26 = vector.load %arg5[%c0_20, %c0_21] : memref<32x32xf32, #tpu.memory_space<vmem>>, vector<32x32xf32>
    %cst_22 = arith.constant dense<0.000000e+00> : vector<8x32xf32>
    %27 = tpu.matmul %15, %26, %cst_22 {dimension_numbers = #tpu.dot_dimension_numbers<[1], [0], [0], [1], [0, 0, 1, 1], [], []>} : vector<8x32xf32>, vector<32x32xf32>, vector<8x32xf32> -> vector<8x32xf32>
    %c2 = arith.constant 2 : index
    %c0_23 = arith.constant 0 : index
    %28 = vector.load %arg6[%c2, %c0_23] : memref<3x32xf32, #tpu.memory_space<vmem>>, vector<1x32xf32>
    %29 = vector.broadcast %28 : vector<1x32xf32> to vector<8x32xf32>
    %30 = arith.addf %27, %29 : vector<8x32xf32>
    %31 = vector.shape_cast %20 : vector<8x32xf32> to vector<4x2x32xf32>
    %32 = vector.shape_cast %25 : vector<8x32xf32> to vector<4x2x32xf32>
    %33 = vector.shape_cast %30 : vector<8x32xf32> to vector<4x2x32xf32>
    "tpu.trace_start"() <{level = 10 : i32, message = "tbd,tcd->tbc"}> : () -> ()
    %cst_24 = arith.constant dense<0.000000e+00> : vector<4x2x2xf32>
    %34 = tpu.matmul %31, %32, %cst_24 {dimension_numbers = #tpu.dot_dimension_numbers<[2], [2], [1], [1], [0, 0, 0, 1, 1, 1], [0], [0]>} : vector<4x2x32xf32>, vector<4x2x32xf32>, vector<4x2x2xf32> -> vector<4x2x2xf32>
    "tpu.trace_stop"() : () -> ()
    %cst_25 = arith.constant 0.176776692 : f32
    %35 = vector.broadcast %cst_25 : f32 to vector<4x2x2xf32>
    %36 = arith.mulf %34, %35 : vector<4x2x2xf32>
    %cst_26 = arith.constant dense<0xFF800000> : vector<4x2xf32>
    %37 = vector.multi_reduction <maximumf>, %36, %cst_26 [2] : vector<4x2x2xf32> to vector<4x2xf32>
    %38 = vector.shape_cast %37 : vector<4x2xf32> to vector<4x2x1xf32>
    %39 = vector.broadcast %38 : vector<4x2x1xf32> to vector<4x2x2xf32>
    %40 = arith.subf %36, %39 : vector<4x2x2xf32>
    %41 = math.exp %40 : vector<4x2x2xf32>
    %cst_27 = arith.constant dense<0.000000e+00> : vector<4x2xf32>
    %42 = vector.multi_reduction <add>, %41, %cst_27 [2] : vector<4x2x2xf32> to vector<4x2xf32>
    %43 = vector.shape_cast %42 : vector<4x2xf32> to vector<4x2x1xf32>
    %44 = tpu.reciprocal %43 {approx = true} : vector<4x2x1xf32> -> vector<4x2x1xf32>
    %45 = vector.broadcast %44 : vector<4x2x1xf32> to vector<4x2x2xf32>
    %46 = arith.mulf %41, %45 : vector<4x2x2xf32>
    "tpu.trace_start"() <{level = 10 : i32, message = "tbc,tcd->tbd"}> : () -> ()
    %cst_28 = arith.constant dense<0.000000e+00> : vector<4x2x32xf32>
    %47 = tpu.matmul %46, %33, %cst_28 {dimension_numbers = #tpu.dot_dimension_numbers<[2], [1], [1], [2], [0, 0, 0, 1, 1, 2], [0], [0]>} : vector<4x2x2xf32>, vector<4x2x32xf32>, vector<4x2x32xf32> -> vector<4x2x32xf32>
    "tpu.trace_stop"() : () -> ()
    %c0_29 = arith.constant 0 : index
    %c0_30 = arith.constant 0 : index
    %48 = vector.load %arg13[%c0_29, %c0_30] : memref<2x32xf32, #tpu.memory_space<vmem>>, vector<2x32xf32>
    %cst_31 = arith.constant dense<0.000000e+00> : vector<2x32xf32>
    %49 = vector.multi_reduction <add>, %47, %cst_31 [0] : vector<4x2x32xf32> to vector<2x32xf32>
    %50 = arith.addf %48, %49 : vector<2x32xf32>
    %c0_32 = arith.constant 0 : index
    %c0_33 = arith.constant 0 : index
    %51 = vector.load %arg13[%c0_32, %c0_33] : memref<2x32xf32, #tpu.memory_space<vmem>>, vector<2x32xf32>
    tpu.vector_store %arg13[%c0_32, %c0_33], %50 {strides = array<i32>} : memref<2x32xf32, #tpu.memory_space<vmem>>, vector<2x32xf32>,
    %c1_i32 = arith.constant 1 : i32
    %52 = arith.cmpi eq, %arg0, %c1_i32 : i32
    %53 = arith.extui %52 : i1 to i32
    %c0_i32_34 = arith.constant 0 : i32
    %54 = arith.cmpi ne, %53, %c0_i32_34 : i32
    scf.if %54 {
      %c0_35 = arith.constant 0 : index
      %c0_36 = arith.constant 0 : index
      %55 = vector.load %arg13[%c0_35, %c0_36] : memref<2x32xf32, #tpu.memory_space<vmem>>, vector<2x32xf32>
      %c0_37 = arith.constant 0 : index
      %c0_38 = arith.constant 0 : index
      %56 = vector.load %arg7[%c0_37, %c0_38] : memref<32x32xf32, #tpu.memory_space<vmem>>, vector<32x32xf32>
      %cst_39 = arith.constant dense<0.000000e+00> : vector<2x32xf32>
      %57 = tpu.matmul %55, %56, %cst_39 {dimension_numbers = #tpu.dot_dimension_numbers<[1], [0], [0], [1], [0, 0, 1, 1], [], []>} : vector<2x32xf32>, vector<32x32xf32>, vector<2x32xf32> -> vector<2x32xf32>
      %c0_40 = arith.constant 0 : index
      %c0_41 = arith.constant 0 : index
      %58 = vector.load %arg8[%c0_40, %c0_41] : memref<1x32xf32, #tpu.memory_space<vmem>>, vector<1x32xf32>
      %cst_42 = arith.constant 8.000000e+00 : f32
      %59 = vector.broadcast %cst_42 : f32 to vector<1x32xf32>
      %60 = arith.mulf %59, %58 : vector<1x32xf32>
      %61 = vector.broadcast %60 : vector<1x32xf32> to vector<2x32xf32>
      %62 = arith.addf %57, %61 : vector<2x32xf32>
      %c0_43 = arith.constant 0 : index
      %c0_44 = arith.constant 0 : index
      %63 = vector.load %arg14[%c0_43, %c0_44] : memref<2x32xf32, #tpu.memory_space<vmem>>, vector<2x32xf32>
      %64 = arith.divf %62, %63 : vector<2x32xf32>
      %c0_45 = arith.constant 0 : index
      %c0_46 = arith.constant 0 : index
      %c0_47 = arith.constant 0 : index
      %65 = vector.load %arg9[%c0_45, %c0_46, %c0_47] : memref<3x32x32xf32, #tpu.memory_space<vmem>>, vector<1x32x32xf32>
      %66 = vector.shape_cast %65 : vector<1x32x32xf32> to vector<32x32xf32>
      %cst_48 = arith.constant dense<0.000000e+00> : vector<2x32xf32>
      %67 = tpu.matmul %64, %66, %cst_48 {dimension_numbers = #tpu.dot_dimension_numbers<[1], [0], [0], [1], [0, 0, 1, 1], [], []>} : vector<2x32xf32>, vector<32x32xf32>, vector<2x32xf32> -> vector<2x32xf32>
      %c0_49 = arith.constant 0 : index
      %c0_50 = arith.constant 0 : index
      %68 = vector.load %arg10[%c0_49, %c0_50] : memref<3x32xf32, #tpu.memory_space<vmem>>, vector<1x32xf32>
      %69 = vector.broadcast %68 : vector<1x32xf32> to vector<2x32xf32>
      %70 = arith.addf %67, %69 : vector<2x32xf32>
      %cst_51 = arith.constant 0.000000e+00 : f32
      %71 = vector.broadcast %cst_51 : f32 to vector<2x32xf32>
      %72 = arith.maximumf %70, %71 : vector<2x32xf32>
      %c1_52 = arith.constant 1 : index
      %c0_53 = arith.constant 0 : index
      %c0_54 = arith.constant 0 : index
      %73 = vector.load %arg9[%c1_52, %c0_53, %c0_54] : memref<3x32x32xf32, #tpu.memory_space<vmem>>, vector<1x32x32xf32>
      %74 = vector.shape_cast %73 : vector<1x32x32xf32> to vector<32x32xf32>
      %cst_55 = arith.constant dense<0.000000e+00> : vector<2x32xf32>
      %75 = tpu.matmul %72, %74, %cst_55 {dimension_numbers = #tpu.dot_dimension_numbers<[1], [0], [0], [1], [0, 0, 1, 1], [], []>} : vector<2x32xf32>, vector<32x32xf32>, vector<2x32xf32> -> vector<2x32xf32>
      %c1_56 = arith.constant 1 : index
      %c0_57 = arith.constant 0 : index
      %76 = vector.load %arg10[%c1_56, %c0_57] : memref<3x32xf32, #tpu.memory_space<vmem>>, vector<1x32xf32>
      %77 = vector.broadcast %76 : vector<1x32xf32> to vector<2x32xf32>
      %78 = arith.addf %75, %77 : vector<2x32xf32>
      %cst_58 = arith.constant 0.000000e+00 : f32
      %79 = vector.broadcast %cst_58 : f32 to vector<2x32xf32>
      %80 = arith.maximumf %78, %79 : vector<2x32xf32>
      %c2_59 = arith.constant 2 : index
      %c0_60 = arith.constant 0 : index
      %c0_61 = arith.constant 0 : index
      %81 = vector.load %arg9[%c2_59, %c0_60, %c0_61] : memref<3x32x32xf32, #tpu.memory_space<vmem>>, vector<1x32x32xf32>
      %82 = vector.shape_cast %81 : vector<1x32x32xf32> to vector<32x32xf32>
      %cst_62 = arith.constant dense<0.000000e+00> : vector<2x32xf32>
      %83 = tpu.matmul %80, %82, %cst_62 {dimension_numbers = #tpu.dot_dimension_numbers<[1], [0], [0], [1], [0, 0, 1, 1], [], []>} : vector<2x32xf32>, vector<32x32xf32>, vector<2x32xf32> -> vector<2x32xf32>
      %c2_63 = arith.constant 2 : index
      %c0_64 = arith.constant 0 : index
      %84 = vector.load %arg10[%c2_63, %c0_64] : memref<3x32xf32, #tpu.memory_space<vmem>>, vector<1x32xf32>
      %85 = vector.broadcast %84 : vector<1x32xf32> to vector<2x32xf32>
      %86 = arith.addf %83, %85 : vector<2x32xf32>
      %c0_65 = arith.constant 0 : index
      %c0_66 = arith.constant 0 : index
      %87 = vector.load %arg11[%c0_65, %c0_66] : memref<2x32xf32, #tpu.memory_space<vmem>>, vector<2x32xf32>
      tpu.vector_store %arg11[%c0_65, %c0_66], %86 {strides = array<i32>} : memref<2x32xf32, #tpu.memory_space<vmem>>, vector<2x32xf32>,
      %88 = vector.shape_cast %70 : vector<2x32xf32> to vector<1x2x32xf32>
      %89 = vector.shape_cast %78 : vector<2x32xf32> to vector<1x2x32xf32>
      %90 = vector.shape_cast %86 : vector<2x32xf32> to vector<1x2x32xf32>
      %91 = tpu.concatenate %88, %89, %90 in 0 : vector<1x2x32xf32>, vector<1x2x32xf32>, vector<1x2x32xf32> -> vector<3x2x32xf32>
      %c0_67 = arith.constant 0 : index
      %c0_68 = arith.constant 0 : index
      %c0_69 = arith.constant 0 : index
      %92 = vector.load %arg12[%c0_67, %c0_68, %c0_69] : memref<3x2x32xf32, #tpu.memory_space<vmem>>, vector<3x2x32xf32>
      tpu.vector_store %arg12[%c0_67, %c0_68, %c0_69], %91 {strides = array<i32>} : memref<3x2x32xf32, #tpu.memory_space<vmem>>, vector<3x2x32xf32>,
    } else {
    }
    return
  }
  func.func @transform_0(%arg0: i32) -> (i32, i32, i32) {
    %c0_i32 = arith.constant 0 : i32
    %c0_i32_0 = arith.constant 0 : i32
    %c0_i32_1 = arith.constant 0 : i32
    return %arg0, %c0_i32, %c0_i32_0 : i32, i32, i32
  }
  func.func @transform_1(%arg0: i32) -> (i32, i32, i32) {
    %c0_i32 = arith.constant 0 : i32
    %c0_i32_0 = arith.constant 0 : i32
    %c0_i32_1 = arith.constant 0 : i32
    return %arg0, %c0_i32, %c0_i32_0 : i32, i32, i32
  }
  func.func @transform_2(%arg0: i32) -> (i32, i32) {
    %c0_i32 = arith.constant 0 : i32
    %c0_i32_0 = arith.constant 0 : i32
    %c0_i32_1 = arith.constant 0 : i32
    return %c0_i32, %c0_i32_0 : i32, i32
  }
  func.func @transform_3(%arg0: i32) -> (i32, i32) {
    %c0_i32 = arith.constant 0 : i32
    %c0_i32_0 = arith.constant 0 : i32
    %c0_i32_1 = arith.constant 0 : i32
    return %c0_i32, %c0_i32_0 : i32, i32
  }
  func.func @transform_4(%arg0: i32) -> (i32, i32) {
    %c0_i32 = arith.constant 0 : i32
    %c0_i32_0 = arith.constant 0 : i32
    %c0_i32_1 = arith.constant 0 : i32
    return %c0_i32, %c0_i32_0 : i32, i32
  }
  func.func @transform_5(%arg0: i32) -> (i32, i32) {
    %c0_i32 = arith.constant 0 : i32
    %c0_i32_0 = arith.constant 0 : i32
    %c0_i32_1 = arith.constant 0 : i32
    return %c0_i32, %c0_i32_0 : i32, i32
  }
  func.func @transform_6(%arg0: i32) -> (i32, i32) {
    %c0_i32 = arith.constant 0 : i32
    %c0_i32_0 = arith.constant 0 : i32
    %c0_i32_1 = arith.constant 0 : i32
    return %c0_i32, %c0_i32_0 : i32, i32
  }
  func.func @transform_7(%arg0: i32) -> (i32, i32) {
    %c0_i32 = arith.constant 0 : i32
    %c0_i32_0 = arith.constant 0 : i32
    %c0_i32_1 = arith.constant 0 : i32
    return %c0_i32, %c0_i32_0 : i32, i32
  }
  func.func @transform_8(%arg0: i32) -> (i32, i32, i32) {
    %c0_i32 = arith.constant 0 : i32
    %c0_i32_0 = arith.constant 0 : i32
    %c0_i32_1 = arith.constant 0 : i32
    %c0_i32_2 = arith.constant 0 : i32
    return %c0_i32, %c0_i32_0, %c0_i32_1 : i32, i32, i32
  }
  func.func @transform_9(%arg0: i32) -> (i32, i32) {
    %c0_i32 = arith.constant 0 : i32
    %c0_i32_0 = arith.constant 0 : i32
    %c0_i32_1 = arith.constant 0 : i32
    return %c0_i32, %c0_i32_0 : i32, i32
  }
  func.func @transform_10(%arg0: i32) -> (i32, i32) {
    %c0_i32 = arith.constant 0 : i32
    %c0_i32_0 = arith.constant 0 : i32
    %c0_i32_1 = arith.constant 0 : i32
    return %c0_i32, %c0_i32_0 : i32, i32
  }
  func.func @transform_11(%arg0: i32) -> (i32, i32, i32) {
    %c0_i32 = arith.constant 0 : i32
    %c0_i32_0 = arith.constant 0 : i32
    %c0_i32_1 = arith.constant 0 : i32
    %c0_i32_2 = arith.constant 0 : i32
    return %c0_i32, %c0_i32_0, %c0_i32_1 : i32, i32, i32
  }
}

</mosaic_0001>

<bundles_post_ra>
// kernel: tpu_custom_call.1
= control target key start
LH: loop header
LB: loop body
LE: loop exit
PB: predicated region body
PF: predicated region fallthrough
CT: control target
= control target key end

     0   :  { %s3144_s0 = inlined_call_operand.hbm [shape: f32[8,2,32], index: 0, kind: input, shape index: {}]   ;;  %s3145_s1 = inlined_call_operand.vmem [shape: f32[8,2,1], index: 1, kind: input, shape index: {}]   ;;  %s3146_s2 = inlined_call_operand.hbm [shape: f32[32,32], index: 2, kind: input, shape index: {}]   ;;  %s3147_s3 = inlined_call_operand.hbm [shape: f32[32,32], index: 3, kind: input, shape index: {}]   ;;  %s3148_s4 = inlined_call_operand.vmem [shape: f32[32,32], index: 4, kind: input, shape index: {}]   ;;  %s3149_s5 = inlined_call_operand.vmem [shape: f32[3,32], index: 5, kind: input, shape index: {}]   ;;  %s3150_s6 = inlined_call_operand.hbm [shape: f32[32,32], index: 6, kind: input, shape index: {}]   ;;  %s3151_s7 = inlined_call_operand.vmem [shape: f32[1,32], index: 7, kind: input, shape index: {}]   ;;  %s3152_s8 = inlined_call_operand.hbm [shape: f32[3,32,32], index: 8, kind: input, shape index: {}]   ;;  %s3153_s9 = inlined_call_operand.vmem [shape: f32[3,32], index: 9, kind: input, shape index: {}]   ;;  %s3154_s10 = inlined_call_operand.hbm [shape: f32[2,32], index: 10, kind: output, shape index: {0}]   ;;  %s3155_s11 = inlined_call_operand.hbm [shape: f32[3,2,32], index: 11, kind: output, shape index: {1}]  }
   0x1   :  { %3162 = sst [smem:[#allocation21_spill]] %s3153_s9 }
   0x2   :  { %3163 = sst [smem:[#allocation22_spill]] %s3154_s10 }
   0x3   :  { %3164 = sst [smem:[#allocation23_spill]] %s3155_s11 }
   0x4   :  { %17 = vsyncpa [#allocation5], 0 }
   0x5   :  { %19 = vsyncpa [#allocation5 + $0x1], 0 }
   0x6   :  { %20 = vsyncpa [#allocation8], 0 }
   0x7   :  { %21 = vsyncpa [#allocation11], 0 }
   0x8   :  { %22 = vsyncpa [#allocation6], 0 }
   0x9   :  { %23 = vsyncpa [#allocation15], 0  ;;  %s2712_s17 = smov 0   ;;  %s2714_s18 = smov 0  }
   0xa   :  { %s2716_s19 = smov 0   ;;  %s2718_s20 = smov 0  }
   0xb LB: > { %s2731_s21 = sadd.s32 4294967295, %s2628_s20   ;;  %p49_p0 = scmp.ne.s32.totalorder %s2620_s18, %s2616_s17  ;;  %s2628_s20 = sphi %s2718_s20, %s3184_s20   ;;  %s2624_s19 = sphi %s2716_s19, %s3183_s19   ;;  %s2620_s18 = sphi %s2714_s18, %s3182_s18   ;;  %s2616_s17 = sphi %s2712_s17, %s3181_s17  }
   0xc   : > { %p3156_p1 = scmp.eq.s32.totalorder %s2731_s21, 0  ;;  %p1986_p2 = scmp.ge.s32.totalorder %s2628_s20, 1 }
   0xd   : > { %p296_p3 = scmp.lt.s32.totalorder %s2628_s20, 3  ;;  %s2630_s24 = smov [#allocation7]  }
   0xe   : > { %p2740_p5 = por %p3156_p1, %p49_p0  ;;  %s308_s25 = sshll.u32 %s2630_s24, 4  ;;  %s2748_s25 = int_to_ptr.vmem [resolvable:$true] %s308_s25 }
   0xf   : > { %p2744_p6 = pnand %p1986_p2, %p296_p3  ;;  %s2631_s27 = smov [#allocation10]  }
  0x10   : > { %s3165_s22 = scalar_select %p2740_p5, 1, 0 }
  0x11   : > { %s3166_s23 = scalar_select %p2744_p6, 1, 0 }
  0x12   : > { %p2281_p7 = pneg %p2744_p6  ;;  %s340_s28 = sshll.u32 %s2631_s27, 4  ;;  %s2758_s28 = int_to_ptr.vmem [resolvable:$true] %s340_s28 }
  0x13   : > { %s2632_s29 = smov [#allocation9]   ;;  %s2384_s14 = scalar_lea.hbm %s3146_s2, 512 }
  0x14   : > { %p2754_p8 = pnand %p2281_p7, %p3156_p1  ;;  %s2760_s30 = sshll.u32 %s2632_s29, 4  ;;  %s322_s30 = int_to_ptr.vmem [resolvable:$true] %s2760_s30 }
  0x15   : > { %p2385_p9 = scmp.ne.s32.totalorder %s3146_s2, %s2384_s14  ;;  %p2391_p13 = scmp.lt.u32.totalorder %s2384_s14, %s3146_s2 }
  0x16   : > { %p2770_p10 = pneg %p2754_p8 }
  0x18   : > { %p2387_p11 = pnand %p2770_p10, %p2385_p9 }
  0x1a   : > { %p2388_p12 = pneg %p2387_p11 }
  0x1c   : > { %p2393_p0 = pnand %p2391_p13, %p2388_p12 }
  0x1e   : > { %2396 = shalt.err (!%p2393_p0)
}
  0x1f   : > { %s2397_s29 = scalar_lea.vmem %s2748_s25, 512  ;;  %p2405_p4 = scmp.lt.s32.totalorder %s2748_s25, %s2748_s25 }
  0x20   : > { %p2398_p2 = scmp.ne.s32.totalorder %s2748_s25, %s2397_s29  ;;  %p2406_p1 = scmp.lt.s32.totalorder %s2397_s29, %s2397_s29 }
  0x22   : > { %p2400_p3 = pnand %p2398_p2, %p2770_p10  ;;  %p2407_p9 = por %p2406_p1, %p2405_p4 }
  0x24   : > { %p2401_p7 = pneg %p2400_p3 }
  0x26   : > { %p2408_p11 = pnand %p2407_p9, %p2401_p7 }
  0x28   : > { %2411 = shalt.err (!%p2408_p11)
}
  0x29   : > { %s2633_s12 = smov 128   ;;  %s2634_s13 = smov 8  }
  0x2a   : > { %2284 = dma.hbm_to_vmem [thread:$0]  (!%p2754_p8), %s3146_s2, 512, %s2748_s25, [#allocation8], %s2633_s12, %s2633_s12, %s2634_s13  }
  0x2b   : > { %s2412_s27 = scalar_lea.hbm %s3150_s6, 512 }
  0x2c   : > { %p2413_p1 = scmp.ne.s32.totalorder %s3150_s6, %s2412_s27  ;;  %p2419_p13 = scmp.lt.u32.totalorder %s2412_s27, %s3150_s6 }
  0x2e   : > { %p2415_p4 = pnand %p2413_p1, %p2770_p10 }
  0x30   : > { %p2416_p12 = pneg %p2415_p4 }
  0x32   : > { %p2421_p0 = pnand %p2419_p13, %p2416_p12 }
  0x34   : > { %2424 = shalt.err (!%p2421_p0)
}
  0x35   : > { %s2425_s25 = scalar_lea.vmem %s2758_s28, 512  ;;  %p2433_p9 = scmp.lt.s32.totalorder %s2758_s28, %s2758_s28 }
  0x36   : > { %p2426_p2 = scmp.ne.s32.totalorder %s2758_s28, %s2425_s25  ;;  %p2434_p11 = scmp.lt.s32.totalorder %s2425_s25, %s2425_s25 }
  0x38   : > { %p2428_p3 = pnand %p2426_p2, %p2770_p10  ;;  %p2435_p1 = por %p2434_p11, %p2433_p9 }
  0x3a   : > { %p2429_p7 = pneg %p2428_p3 }
  0x3c   : > { %p2436_p4 = pnand %p2435_p1, %p2429_p7 }
  0x3e   : > { %2439 = shalt.err (!%p2436_p4)
}
  0x3f   : > { %2290 = dma.hbm_to_vmem [thread:$0]  (!%p2754_p8), %s3150_s6, 512, %s2758_s28, [#allocation11], %s2633_s12, %s2633_s12, %s2634_s13  }
  0x40   : > { %s2440_s15 = scalar_lea.hbm %s3147_s3, 512 }
  0x41   : > { %p2441_p12 = scmp.ne.s32.totalorder %s3147_s3, %s2440_s15  ;;  %p2447_p2 = scmp.lt.u32.totalorder %s2440_s15, %s3147_s3 }
  0x43   : > { %p2443_p13 = pnand %p2441_p12, %p2770_p10 }
  0x45   : > { %p2444_p0 = pneg %p2443_p13 }
  0x47   : > { %p2449_p3 = pnand %p2447_p2, %p2444_p0 }
  0x49   : > { %2452 = shalt.err (!%p2449_p3)
}
  0x4a   : > { %s2453_s25 = scalar_lea.vmem %s322_s30, 512  ;;  %p2461_p1 = scmp.lt.s32.totalorder %s322_s30, %s322_s30 }
  0x4b   : > { %p2454_p7 = scmp.ne.s32.totalorder %s322_s30, %s2453_s25  ;;  %p2462_p4 = scmp.lt.s32.totalorder %s2453_s25, %s2453_s25 }
  0x4d   : > { %p2456_p9 = pnand %p2454_p7, %p2770_p10  ;;  %p2463_p5 = por %p2462_p4, %p2461_p1 }
  0x4f   : > { %p2457_p11 = pneg %p2456_p9 }
  0x51   : > { %p2464_p6 = pnand %p2463_p5, %p2457_p11 }
  0x53   : > { %2467 = shalt.err (!%p2464_p6)
}
  0x54   : > { %2287 = dma.hbm_to_vmem [thread:$0]  (!%p2754_p8), %s3147_s3, 512, %s322_s30, [#allocation8], %s2633_s12, %s2633_s12, %s2634_s13  }
  0x55   : > { %s2635_s10 = smov [#allocation12]   ;;  %s2468_s16 = scalar_lea.hbm %s3152_s8, 1536 }
  0x56   : > { %s356_s11 = sshll.u32 %s2635_s10, 4  ;;  %p2469_p5 = scmp.ne.s32.totalorder %s3152_s8, %s2468_s16  ;;  %s357_s11 = int_to_ptr.vmem [resolvable:$true] %s356_s11 }
  0x57   : > { %p2475_p13 = scmp.lt.u32.totalorder %s2468_s16, %s3152_s8 }
  0x58   : > { %p2471_p6 = pnand %p2469_p5, %p2770_p10 }
  0x5a   : > { %p2472_p12 = pneg %p2471_p6 }
  0x5c   : > { %p2477_p0 = pnand %p2475_p13, %p2472_p12 }
  0x5e   : > { %2480 = shalt.err (!%p2477_p0)
}
  0x5f   : > { %s2481_s30 = scalar_lea.vmem %s357_s11, 1536  ;;  %p2489_p9 = scmp.lt.s32.totalorder %s357_s11, %s357_s11 }
  0x60   : > { %p2482_p2 = scmp.ne.s32.totalorder %s357_s11, %s2481_s30  ;;  %p2490_p11 = scmp.lt.s32.totalorder %s2481_s30, %s2481_s30 }
  0x62   : > { %p2484_p3 = pnand %p2482_p2, %p2770_p10  ;;  %p2491_p1 = por %p2490_p11, %p2489_p9 }
  0x64   : > { %p2485_p7 = pneg %p2484_p3 }
  0x66   : > { %p2492_p4 = pnand %p2491_p1, %p2485_p7 }
  0x68   : > { %2495 = shalt.err (!%p2492_p4)
}
  0x69   : > { %2293 = dma.hbm_to_vmem [thread:$0]  (!%p2754_p8), %s3152_s8, 1536, %s357_s11, [#allocation11], %s2633_s12, %s2633_s12, %s2634_s13  }
  0x6a   : > { %s2864_s17 = sadd.s32 1, %s2628_s20   ;;  %s36_s26 = sadd.s32 1, %s2624_s19 }
  0x6b   : > { %s33_s10 = ssub.s32 %s2628_s20, %s2864_s17  ;;  %p43_p10 = scmp.ne.s32.totalorder %s2624_s19, %s2620_s18 }
  0x6c   : > { %p34_p5 = scmp.eq.s32.totalorder %s33_s10, 0  ;;  %p44_p6 = scmp.eq.s32.totalorder %s2628_s20, 0 }
  0x6d   : > { %p2302_p12 = scmp.lt.s32.totalorder %s2628_s20, 2  ;;  %s373_s14 = sand.u32 1, %s2624_s19  }
  0x6e   : > { %s2875_s15 = scalar_select %p34_p5, %s2624_s19, %s36_s26  }
  0x6f   : > { %p45_p13 = por %p44_p6, %p43_p10  ;;  %s1992_s16 = sshll.u32 %s373_s14, 3 }
  0x70   : > { %s2044_s24 = sshll.u32 %s2628_s20, 7  ;;  %s377_s12 = scalar_lea.vmem [#allocation4], %s1992_s16 }
  0x71   : > { %s2881_s25 = scalar_lea.hbm %s3144_s0, %s2044_s24  ;;  %s384_s13 = sshll.u32 %s377_s12, 4  ;;  %s2887_s13 = int_to_ptr.vmem [resolvable:$true] %s384_s13 }
  0x72   : > { %p2883_p8 = pnand %p2302_p12, %p45_p13  ;;  %s2889_s20 = scalar_lea.sflag [#allocation5], %s373_s14 }
  0x73   : > { %s2496_s30 = scalar_lea.hbm %s2881_s25, 128  ;;  %s2501_s26 = scalar_lea.hbm %s3144_s0, 256 }
  0x74   : > { %p2497_p0 = scmp.ne.s32.totalorder %s2881_s25, %s2496_s30  ;;  %p2498_p2 = pneg %p2883_p8 }
  0x75   : > { %p2502_p9 = scmp.lt.u32.totalorder %s2881_s25, %s3144_s0  ;;  %p2503_p11 = scmp.lt.u32.totalorder %s2501_s26, %s2496_s30 }
  0x76   : > { %p2499_p3 = pnand %p2498_p2, %p2497_p0  ;;  %p2505_p4 = scmp.lt.u32.totalorder %s2496_s30, %s2881_s25 }
  0x77   : > { %p2504_p1 = por %p2503_p11, %p2502_p9 }
  0x78   : > { %p2500_p7 = pneg %p2499_p3 }
  0x79   : > { %p2506_p10 = por %p2505_p4, %p2504_p1 }
  0x7b   : > { %p2507_p5 = pnand %p2506_p10, %p2500_p7 }
  0x7d   : > { %2510 = shalt.err (!%p2507_p5)
}
  0x7e   : > { %s2511_s14 = scalar_lea.vmem %s2887_s13, 128  ;;  %s2636_s24 = smov [#allocation4]  }
  0x7f   : > { %p2512_p6 = scmp.ne.s32.totalorder %s2887_s13, %s2511_s14  ;;  %s2516_s27 = sshll.u32 %s2636_s24, 4  ;;  %s2517_s27 = int_to_ptr.vmem [resolvable:$false] %s2516_s27 }
  0x80   : > { %s2518_s29 = scalar_lea.vmem %s2517_s27, 256  ;;  %p2519_p0 = scmp.lt.s32.totalorder %s2887_s13, %s2517_s27 }
  0x81   : > { %p2514_p12 = pnand %p2512_p6, %p2498_p2  ;;  %p2520_p3 = scmp.lt.s32.totalorder %s2518_s29, %s2511_s14 }
  0x83   : > { %p2515_p13 = pneg %p2514_p12  ;;  %p2521_p9 = por %p2520_p3, %p2519_p0 }
  0x85   : > { %p2522_p11 = pnand %p2521_p9, %p2515_p13 }
  0x87   : > { %2525 = shalt.err (!%p2522_p11)
}
  0x88   : > { %s2637_s12 = smov 32   ;;  %s2638_s30 = smov 2  }
  0x89   : > { %2297 = dma.hbm_to_vmem [thread:$0]  (!%p2883_p8), %s2881_s25, 128, %s2887_s13, %s2889_s20, %s2637_s12, %s2637_s12, %s2638_s30  }
  0x8a   : > { %p3170_p2 = scmp.ne.s32.totalorder %s3166_s23, 0 }
  0x8b   : > { %s407_s28 = sand.u32 (!%p3170_p2), 1, %s2620_s18   ;;  %p3171_p7 = scmp.ne.s32.totalorder (!%p3170_p2), %s3165_s22, 0 }
  0x8c   : > { %405 = sbr.rel (%p3170_p2) target bundleno = 2209 (0x8a1), region = 60  ;;  %s1996_s9 = sshll.u32 (!%p3170_p2), %s407_s28, 3 }
  0x8d   : > { %s408_s26 = scalar_lea.sflag (!%p3170_p2), [#allocation5], %s407_s28  ;;  %s2920_s10 = scalar_lea.vmem (!%p3170_p2), [#allocation4], %s1996_s9 }
  0x93   : > { %2595 = dma.done.wait (%p3171_p7), %s408_s26, 128  }
  0x94   : > { %2597 = vsyncadd (%p3171_p7), %s408_s26, 4294967168  ;;  %p3172_p1 = scmp.eq.s32.totalorder %s2731_s21, 0 }
  0x96   : > { %2599 = dma.done.wait (%p3172_p1), [#allocation8], 1024   ;;  %p3173_p8 = pmov %p3172_p1 }
  0x97   : > { %p3174_p4 = pmov %p3172_p1 }
  0x98   : > { %2601 = vsyncadd (%p3173_p8), [#allocation8], 4294966272 }
  0x99   : > { %2603 = dma.done.wait (%p3174_p4), [#allocation11], 2048   ;;  %p3175_p10 = pmov %p3172_p1 }
  0x9a   : > { %s2001_s23 = sshll.u32 %s2731_s21, 2  ;;  %p3176_p6 = scmp.ne.s32.totalorder %s2731_s21, 0 }
  0x9b   : > { %2605 = vsyncadd (%p3175_p10), [#allocation11], 4294965248  ;;  %p468_p5 = scmp.lt.s32.totalorder %s2001_s23, 7  ;;  %vm477_vm0 = vcmask (!%p3176_p6), 254976   ;;  %v2639_v0 = vmov (!%p3176_p6), 0.0  }
  0x9c   : > { %476 = sbr.rel (%p3176_p6) target bundleno = 163 (0xa3), region = 84  ;;  %478 = vst.msk [vmem:[#allocation2] sm:$0x3] (!%p3176_p6), %vm477_vm0, %v2639_v0  ;;  %479 = vst.msk [vmem:[#allocation3] sm:$0x3] (!%p3176_p6), %vm477_vm0, %v2639_v0 }
  0x9d   : > { %s3186_s23 = smov (!%p468_p5, %s2001_s23), 7 }
  0x9e   : > { %s2002_s25 = sshll.u32 %s3186_s23, 1 }
  0x9f   : > { %s471_s11 = scalar_lea.vmem %s3145_s1, %s2002_s25 }
  0xa3 PF: > { %v486_v1 = vld [vmem:[%s471_s11 + $0x4] sm:$0x3]  ;;  %v484_v2 = vld [vmem:[%s471_s11] sm:$0x3]  ;;  %v2640_v3 = vmov 0   ;;  %v535_v6 = vld [vmem:[#allocation7] sm:$0xff]  ;;  %v553_v22 = vlaneseq }
  0xa4   : > { %2365 = vset.pattern.permute.xlu1 %v2640_v3  ;;  %2364 = vset.pattern.permute.xlu0 %v2640_v3  ;;  %v487_v4 = vld [vmem:[%s471_s11 + $0x6] sm:$0x3]  ;;  %v485_v5 = vld [vmem:[%s471_s11 + $0x2] sm:$0x3]  ;;  %v638_v9 = vld [vmem:[#allocation9] sm:$0xff]  ;;  %v2641_v11 = vmov 0.0|0.0  }
  0xa5   : > { %500 = vperm.xlu1 %2365, %v486_v1   ;;  %490 = vperm.xlu0 %2364, %v484_v2   ;;  %v536_v7 = vld [vmem:[#allocation7 + $0x8] sm:$0xff]  ;;  %v537_v13 = vld [vmem:[#allocation7 + $0x10] sm:$0xff]  ;;  %v538_v14 = vld [vmem:[#allocation7 + $0x18] sm:$0xff]  ;;  %v2642_v19 = vmov 0.0   ;;  %vm2643_vm1 = vmmov 0   ;;  %v2952_v30 = vshrl.u32 %v553_v22, 7 }
  0xa6   : > { %v2214_v8 = vpack.c.bf16 %v536_v7, %v535_v6  ;;  %v639_v10 = vld [vmem:[#allocation9 + $0x8] sm:$0xff]  ;;  %2213 = vmatprep.subr.bf16.mxu0 %v2641_v11  ;;  %2219 = vmatprep.subr.bf16.mxu1 %v2641_v11  ;;  %v2217_v15 = vpack.c.bf16 %v538_v14, %v537_v13  ;;  %v640_v16 = vld [vmem:[#allocation9 + $0x10] sm:$0xff]  ;;  %v641_v17 = vld [vmem:[#allocation9 + $0x18] sm:$0xff]  ;;  %v2644_v20 = vmov 1983009808   ;;  %vm525_vm4 = vcmask 254976  }
  0xa7   : > { %v2220_v12 = vpack.c.bf16 %v639_v10, %v638_v9  ;;  %v2223_v18 = vpack.c.bf16 %v641_v17, %v640_v16  ;;  %2104 = vmatprep.mubr.msk.f32.mxu0 %vm2643_vm1, %v2642_v19  ;;  %2115 = vmatprep.mubr.msk.f32.mxu1 %vm2643_vm1, %v2642_v19  ;;  %v551_v21 = vunpack.c.l.s4 %v2644_v20  ;;  %v482_v23 = vld [vmem:[%s2920_s10 + $0x4] sm:$0x3]  ;;  %v480_v24 = vld [vmem:[%s2920_s10] sm:$0x3]  ;;  %v483_v31 = vld [vmem:[%s2920_s10 + $0x6] sm:$0x3] }
  0xa8   : > { %2215 = vmatpush3.bf16.msra.mxu0 %v2214_v8  ;;  %v481_v32 = vld [vmem:[%s2920_s10 + $0x2] sm:$0x3]  ;;  %vm565_vm7 = vcmask 261120   ;;  %v719_v54 = vld [vmem:[%s3148_s4 + $0x10] sm:$0xff]  ;;  %v720_v55 = vld [vmem:[%s3148_s4 + $0x18] sm:$0xff]  ;;  %vm1199_vm8 = vcmask 1041408  }
  0xa9   : > { %505 = vperm.xlu1 %2365, %v487_v4   ;;  %495 = vperm.xlu0 %2364, %v485_v5   ;;  %v552_v29 = vunpack.c.0.s8 %v551_v21  ;;  %v717_v41 = vld [vmem:[%s3148_s4] sm:$0xff]  ;;  %v718_v42 = vld [vmem:[%s3148_s4 + $0x8] sm:$0xff]  ;;  %v2229_v60 = vpack.c.bf16 %v720_v55, %v719_v54  ;;  %vm1150_vm9 = vcmask 9216   ;;  %vm1195_vm10 = vcmask 15360   ;;  %p2030_p12 = scmp.ne.s32.totalorder %s2731_s21, 1 }
  0xaa   : > { %2221 = vmatpush3.bf16.msra.mxu1 %v2220_v12  ;;  %2216 = vmatprep.subr.bf16.mxu0 %v2641_v11  ;;  %v2226_v51 = vpack.c.bf16 %v718_v42, %v717_v41  ;;  %v512_v58 = vld [vmem:[#allocation3] sm:$0x3]  ;;  %v2008_v62 = vld [vmem:[%s3149_s5] ss:$0 sm:$0xff]  ;;  %v2010_v63 = vld [vmem:[%s3149_s5 + $0x1] ss:$0 sm:$0xff] }
  0xab   : > { %2222 = vmatprep.subr.bf16.mxu1 %v2641_v11  ;;  %v2957_v35 = vsub.s32 %v552_v29, %v2952_v30  ;;  %vm2646_vm11 = vmmov (!%p2030_p12), 0   ;;  %s3177_s16 = sld [smem:[#allocation21_spill]] (!%p2030_p12) }
  0xac   : > { %2218 = vmatpush3.bf16.msra.mxu0 %v2217_v15 }
  0xad   : > { %2225 = vmatprep.subr.bf16.mxu0 %v2641_v11 }
  0xae   : > { %2224 = vmatpush3.bf16.msra.mxu1 %v2223_v18 }
  0xaf   : > { %2129 = vmatprep.subr.mxu1 %v2642_v19 }
 0x124   : > { %v501_v25 = vpop.permute.xlu1 %500  ;;  %v491_v26 = vpop.permute.xlu0 %490 }
 0x125   : > { %v510_v27 = vmul.f32 %v501_v25, %v482_v23  ;;  %v508_v28 = vmul.f32 %v491_v26, %v480_v24 }
 0x127   : > { %vm513_vm2 = vcmp.ne.f32.partialorder %v508_v28, 0.0  ;;  %vm515_vm3 = vcmp.ne.f32.partialorder %v510_v27, 0.0 }
 0x128   : > { %v506_v33 = vpop.permute.xlu1 %505  ;;  %v496_v34 = vpop.permute.xlu0 %495  ;;  %v2004_v38 = vsel %vm513_vm2, 1.0, %v2642_v19  ;;  %v2006_v43 = vsel %vm515_vm3, 1.0, %v2642_v19 }
 0x129   : > { %v511_v36 = vmul.f32 %v506_v33, %v483_v31  ;;  %v509_v37 = vmul.f32 %v496_v34, %v481_v32  ;;  %v526_v45 = vsel %vm525_vm4, %v2004_v38, 0.0  ;;  %v529_v52 = vsel %vm525_vm4, %v2006_v43, 0.0 }
 0x12b   : > { %vm516_vm5 = vcmp.ne.f32.partialorder %v511_v36, 0.0  ;;  %v549_v39 = vcombine.low %v510_v27, %v511_v36  ;;  %vm514_vm6 = vcmp.ne.f32.partialorder %v509_v37, 0.0  ;;  %v548_v40 = vcombine.low %v508_v28, %v509_v37 }
 0x12c   : > { %v2005_v44 = vsel %vm514_vm6, 1.0, %v2642_v19  ;;  %v2007_v49 = vsel %vm516_vm5, 1.0, %v2642_v19 }
 0x12d   : > { %v563_v46 = vrot.slane %v549_v39, %v2957_v35  ;;  %v527_v47 = vsel %vm525_vm4, %v2005_v44, 0.0  ;;  %v556_v48 = vrot.slane %v548_v40, %v2957_v35  ;;  %v531_v57 = vsel %vm525_vm4, %v2007_v49, 0.0 }
 0x12e   : > { %v528_v50 = vadd.f32 %v527_v47, %v526_v45 }
 0x12f   : > { %v564_v53 = vcombine.low %v556_v48, %v563_v46 }
 0x130   : > { %v530_v56 = vadd.f32 %v529_v52, %v528_v50 }
 0x131   : > { %2105 = vmatmul.mubr.msk.f32.vlgmr.msra.gmra.mrb[0].mxu0 %vm565_vm7, %v564_v53  ;;  %2116 = vmatmul.mubr.msk.f32.vlgmr.msra.gmra.mrb[0].mxu1 %vm565_vm7, %v564_v53 }
 0x132   : > { %v532_v59 = vadd.f32 %v531_v57, %v530_v56  ;;  %2227 = vmatpush3.bf16.msra.mxu0 %v2226_v51  ;;  %2126 = vmatprep.mubr.msk.f32.mxu0 %vm2643_vm1, %v2642_v19 }
 0x133   : > { %2228 = vmatprep.subr.bf16.mxu0 %v2641_v11  ;;  %2131 = vmatprep.mubr.msk.f32.mxu1 %vm2643_vm1, %v2642_v19  ;;  %v2012_v11 = vld [vmem:[%s3149_s5 + $0x2] ss:$0 sm:$0xff] }
 0x134   : > { %v533_v61 = vadd.f32 %v532_v59, %v512_v58 }
 0x136   : > { %534 = vst.msk [vmem:[#allocation3] sm:$0x3] %vm525_vm4, %v533_v61  ;;  %2230 = vmatpush3.bf16.msra.mxu0 %v2229_v60 }
 0x137   : > { %2139 = vmatprep.subr.mxu0 %v2642_v19 }
 0x139   : > { %2127 = vmatmul.mubr.msk.f32.vlgmr.msra.gmra.mrb[2].mxu0 %vm565_vm7, %v564_v53 }
 0x13a   : > { %2141 = vmatprep.mubr.msk.f32.mxu0 %vm2643_vm1, %v2642_v19 }
 0x204   : > { %v634_v0 = vpop.f32.mrb[0].mxu0  ;;  %v713_v1 = vpop.f32.mrb[0].mxu1 }
 0x205   : > { %v635_v2 = vadd.f32 %v2008_v62, %v634_v0  ;;  %v714_v3 = vadd.f32 %v2010_v63, %v713_v1  ;;  %v2106_v4 = vpop.f32.mrb[1].mxu0  ;;  %v2117_v5 = vpop.f32.mrb[1].mxu1 }
 0x207   : > { %v815_v6 = vcombine.high %v714_v3, %v714_v3  ;;  %v822_v7 = vrot.slane %v714_v3, %v2957_v35  ;;  %v797_v8 = vcombine.high %v635_v2, %v635_v2  ;;  %v804_v10 = vrot.slane %v635_v2, %v2957_v35 }
 0x209   : > { %v829_v9 = vrot.slane %v815_v6, %v2957_v35  ;;  %2130 = vmatpush3.xpose.msk.msra.mxu1 %vm565_vm7, %v822_v7  ;;  %v830_v12 = vcombine.high %v822_v7, %v822_v7  ;;  %v811_v13 = vrot.slane %v797_v8, %v2957_v35  ;;  %v812_v17 = vcombine.high %v804_v10, %v804_v10 }
 0x20a   : > { %2134 = vmatprep.subr.mxu1 %v2642_v19 }
 0x20b   : > { %2140 = vmatpush3.xpose.msk.msra.mxu0 %vm565_vm7, %v829_v9  ;;  %v831_v18 = vcombine.high %v829_v9, %v829_v9  ;;  %v813_v21 = vcombine.high %v811_v13, %v811_v13 }
 0x20c   : > { %v792_v14 = vpop.f32.mrb[2].mxu0  ;;  %2132 = vmatmul.mubr.msk.f32.vlgmr.msra.gmra.mrb[2].mxu1 %vm565_vm7, %v804_v10  ;;  %2149 = vmatprep.subr.mxu0 %v2642_v19 }
 0x20d   : > { %v3011_v15 = vadd.f32 %v2012_v11, %v792_v14  ;;  %v2128_v16 = vpop.f32.mrb[3].mxu0  ;;  %2135 = vmatpush3.xpose.msk.msra.mxu1 %vm565_vm7, %v830_v12  ;;  %2136 = vmatprep.mubr.msk.f32.mxu1 %vm2643_vm1, %v2642_v19 }
 0x20e   : > { %2142 = vmatmul.mubr.msk.f32.vlgmr.msra.gmra.mrb[4].mxu0 %vm565_vm7, %v811_v13  ;;  %2144 = vmatprep.subr.mxu1 %v2642_v19 }
 0x20f   : > { %v840_v20 = vrot.slane %v3011_v15, %v2957_v35  ;;  %2151 = vmatprep.mubr.msk.f32.mxu0 %vm2643_vm1, %v2642_v19  ;;  %v833_v1 = vcombine.high %v3011_v15, %v3011_v15 }
 0x210   : > { %2137 = vmatmul.mubr.msk.f32.vlgmr.msra.gmra.mrb[4].mxu1 %vm565_vm7, %v812_v17 }
 0x211   : > { %2150 = vmatpush3.msk.msra.mxu0 %vm1199_vm8, %v840_v20  ;;  %2145 = vmatpush3.xpose.msk.msra.mxu1 %vm565_vm7, %v831_v18  ;;  %v848_v22 = vcombine.high %v840_v20, %v840_v20  ;;  %v847_v4 = vrot.slane %v833_v1, %v2957_v35 }
 0x212   : > { %2146 = vmatprep.mubr.msk.f32.mxu1 %vm2643_vm1, %v2642_v19  ;;  %2154 = vmatprep.subr.mxu1 %v2642_v19 }
 0x213   : > { %2159 = vmatprep.subr.mxu0 %v2642_v19  ;;  %v849_v8 = vcombine.high %v847_v4, %v847_v4 }
 0x214   : > { %2147 = vmatmul.mubr.msk.f32.vlgmr.msra.gmra.mrb[6].mxu1 %vm565_vm7, %v813_v21 }
 0x215   : > { %2155 = vmatpush3.msk.msra.mxu1 %vm1199_vm8, %v848_v22  ;;  %2156 = vmatprep.mubr.msk.f32.mxu1 %vm2643_vm1, %v2642_v19 }
 0x216   : > { %2164 = vmatprep.subr.mxu1 %v2642_v19 }
 0x2df   : > { %v920_v23 = vpop.f32.mrb[2].mxu1 }
 0x2e0   : > { %v1146_v24 = vmul.f32 0.17677669, %v920_v23  ;;  %v2133_v25 = vpop.f32.mrb[3].mxu1 }
 0x2e1   : > { %v1068_v26 = vpop.f32.mrb[4].mxu0 }
 0x2e2   : > { %v1148_v27 = vmul.f32 0.17677669, %v1068_v26  ;;  %v2143_v28 = vpop.f32.mrb[5].mxu0  ;;  %v1151_v29 = vsel %vm1150_vm9, %v1146_v24, -inf }
 0x2e3   : > { %1152 = vmax.xlane.f32.xlu0 %v1151_v29  ;;  %v994_v31 = vpop.f32.mrb[4].mxu1  ;;  %v1512_v28 = vld [vmem:[#allocation10] sm:$0xff] (!%p2030_p12)  ;;  %v1513_v29 = vld [vmem:[#allocation10 + $0x8] sm:$0xff] (!%p2030_p12) }
 0x2e4   : > { %v1147_v32 = vmul.f32 0.17677669, %v994_v31  ;;  %v2138_v33 = vpop.f32.mrb[5].mxu1  ;;  %v1157_v36 = vsel %vm1150_vm9, %v1148_v27, -inf  ;;  %v1514_v31 = vld [vmem:[#allocation10 + $0x10] sm:$0xff] (!%p2030_p12) }
 0x2e5   : > { %v2232_v33 = vpack.c.bf16 (!%p2030_p12), %v1513_v29, %v1512_v28 }
 0x2e6   : > { %v1154_v34 = vsel %vm1150_vm9, %v1147_v32, -inf }
 0x2e7   : > { %1155 = vmax.xlane.f32.xlu1 %v1154_v34  ;;  %v1142_v37 = vpop.f32.mrb[6].mxu1  ;;  %1158 = vmax.xlane.f32.xlu0 %v1157_v36  ;;  %v1515_v34 = vld [vmem:[#allocation10 + $0x18] sm:$0xff] (!%p2030_p12)  ;;  %v2647_v36 = vmov (!%p2030_p12), 0.0  }
 0x2e8   : > { %v1149_v38 = vmul.f32 0.17677669, %v1142_v37  ;;  %v2148_v39 = vpop.f32.mrb[7].mxu1  ;;  %v1600_v37 = vld [vmem:[#allocation12] sm:$0xff] (!%p2030_p12) }
 0x2e9   : > { %v2235_v39 = vpack.c.bf16 (!%p2030_p12), %v1515_v34, %v1514_v31 }
 0x2ea   : > { %v1160_v40 = vsel %vm1150_vm9, %v1149_v38, -inf }
 0x2eb   : > { %1161 = vmax.xlane.f32.xlu0 %v1160_v40 }
 0x370   : > { %v1153_v41 = vpop.xlane.xlu0 %1152 }
 0x371   : > { %v1163_v42 = vsub.f32 %v1146_v24, %v1153_v41  ;;  %v1497_v24 = vld [vmem:[#allocation2] sm:$0x3] }
 0x373   : > { %v1167_v43 = vmul.f32 1.442695, %v1163_v42  ;;  %v1602_v42 = vld [vmem:[#allocation12 + $0x10] sm:$0xff] (!%p2030_p12) }
 0x374   : > { %v1156_v44 = vpop.xlane.xlu1 %1155  ;;  %v1159_v45 = vpop.xlane.xlu0 %1158 }
 0x375   : > { %2366 = vpow2.f32 %v1167_v43  ;;  %v1164_v46 = vsub.f32 %v1147_v32, %v1156_v44  ;;  %v1165_v47 = vsub.f32 %v1148_v27, %v1159_v45  ;;  %v2645_v32 = vmov (!%p2030_p12), 0.0|0.0   ;;  %v1603_v43 = vld [vmem:[#allocation12 + $0x18] sm:$0xff] (!%p2030_p12)  ;;  %v1684_v45 = vld [vmem:[#allocation12 + $0x20] sm:$0xff] (!%p2030_p12) }
 0x376   : > { %v2241_v44 = vpack.c.bf16 (!%p2030_p12), %v1603_v43, %v1602_v42 }
 0x377   : > { %v1169_v48 = vmul.f32 1.442695, %v1164_v46  ;;  %v1171_v49 = vmul.f32 1.442695, %v1165_v47  ;;  %v1685_v46 = vld [vmem:[#allocation12 + $0x28] sm:$0xff] (!%p2030_p12) }
 0x378   : > { %v1162_v50 = vpop.xlane.xlu0 %1161  ;;  %v2244_v47 = vpack.c.bf16 (!%p2030_p12), %v1685_v46, %v1684_v45 }
 0x379   : > { %2368 = vpow2.f32 %v1169_v48  ;;  %v1166_v51 = vsub.f32 %v1149_v38, %v1162_v50  ;;  %v1601_v38 = vld [vmem:[#allocation12 + $0x8] sm:$0xff] (!%p2030_p12) }
 0x37a   : > { %2370 = vpow2.f32 %v1171_v49  ;;  %v2238_v40 = vpack.c.bf16 (!%p2030_p12), %v1601_v38, %v1600_v37  ;;  %v1597_v48 = vld [vmem:[#allocation3] sm:$0x3] (!%p2030_p12)  ;;  %v1516_v49 = vld [vmem:[%s3151_s7] sm:$0x1] (!%p2030_p12) }
 0x37b   : > { %v1173_v52 = vmul.f32 1.442695, %v1166_v51  ;;  %v1517_v50 = vmul.f32 (!%p2030_p12), 8.0, %v1516_v49  ;;  %v1521_v51 = vsub.s32 (!%p2030_p12), 0, %v2952_v30  ;;  %v2032_v30 = vld [vmem:[%s3177_s16] ss:$0 sm:$0xff] (!%p2030_p12) }
 0x37d   : > { %2372 = vpow2.f32 %v1173_v52  ;;  %v1522_v52 = vrot.slane (!%p2030_p12), %v1517_v50, %v1521_v51 }
 0x37f   : > { %v2367_v53 = vpop.eup %2366 }
 0x380   : > { %v1175_v54 = vsel %vm1150_vm9, %v2367_v53, 0.0 }
 0x381   : > { %1176 = vadd.xlane.f32.xlu1 %v1175_v54 }
 0x383   : > { %v2369_v55 = vpop.eup %2368 }
 0x384   : > { %v2371_v56 = vpop.eup %2370  ;;  %v1178_v57 = vsel %vm1150_vm9, %v2369_v55, 0.0 }
 0x385   : > { %1179 = vadd.xlane.f32.xlu0 %v1178_v57  ;;  %v1181_v58 = vsel %vm1150_vm9, %v2371_v56, 0.0 }
 0x386   : > { %1182 = vadd.xlane.f32.xlu1 %v1181_v58  ;;  %v1686_v58 = vld [vmem:[#allocation12 + $0x30] sm:$0xff] (!%p2030_p12) }
 0x387   : > { %v2373_v59 = vpop.eup %2372 }
 0x388   : > { %v1184_v60 = vsel %vm1150_vm9, %v2373_v59, 0.0 }
 0x389   : > { %1185 = vadd.xlane.f32.xlu0 %v1184_v60 }
 0x40e   : > { %v1177_v61 = vpop.xlane.xlu1 %1176 }
 0x40f   : > { %2374 = vrcp.f32 %v1177_v61  ;;  %v1768_v61 = vld [vmem:[#allocation12 + $0x40] sm:$0xff] (!%p2030_p12) }
 0x412   : > { %v1180_v62 = vpop.xlane.xlu0 %1179 }
 0x413   : > { %v1183_v63 = vpop.xlane.xlu1 %1182  ;;  %2376 = vrcp.f32 %v1180_v62  ;;  %v1769_v62 = vld [vmem:[#allocation12 + $0x48] sm:$0xff] (!%p2030_p12) }
 0x414   : > { %2378 = vrcp.f32 %v1183_v63  ;;  %v2250_v63 = vpack.c.bf16 (!%p2030_p12), %v1769_v62, %v1768_v61 }
 0x416   : > { %v1186_v0 = vpop.xlane.xlu0 %1185 }
 0x417   : > { %2380 = vrcp.f32 %v1186_v0 }
 0x418   : > { %2382 = vrcp.f32 (!%p2030_p12), %v1597_v48 }
 0x419   : > { %v2375_v2 = vpop.eup %2374 }
 0x41a   : > { %v1191_v3 = vmul.f32 %v2375_v2, %v2367_v53 }
 0x41c   : > { %2152 = vmatmul.mubr.msk.f32.vlgmr.msra.gmra.mrb[6].mxu0 %vm1195_vm10, %v1191_v3 }
 0x41d   : > { %v2377_v5 = vpop.eup %2376  ;;  %2160 = vmatpush3.msk.msra.mxu0 %vm1199_vm8, %v847_v4  ;;  %2161 = vmatprep.mubr.msk.f32.mxu0 %vm2643_vm1, %v2642_v19  ;;  %v1770_v4 = vld [vmem:[#allocation12 + $0x50] sm:$0xff] (!%p2030_p12) }
 0x41e   : > { %v2379_v6 = vpop.eup %2378  ;;  %v1192_v7 = vmul.f32 %v2377_v5, %v2369_v55  ;;  %2231 = vmatprep.subr.bf16.mxu0 (!%p2030_p12), %v2645_v32  ;;  %v1771_v5 = vld [vmem:[#allocation12 + $0x58] sm:$0xff] (!%p2030_p12) }
 0x41f   : > { %v1193_v9 = vmul.f32 %v2379_v6, %v2371_v56  ;;  %v2253_v6 = vpack.c.bf16 (!%p2030_p12), %v1771_v5, %v1770_v4 }
 0x420   : > { %2157 = vmatmul.mubr.msk.f32.vlgmr.msra.gmra.mrb[8].mxu1 %vm1195_vm10, %v1192_v7  ;;  %v2034_v7 = vld [vmem:[%s3177_s16 + $0x1] ss:$0 sm:$0xff] (!%p2030_p12) }
 0x421   : > { %v2381_v10 = vpop.eup %2380  ;;  %2162 = vmatmul.mubr.msk.f32.vlgmr.msra.gmra.mrb[8].mxu0 %vm1195_vm10, %v1193_v9  ;;  %2165 = vmatpush3.msk.msra.mxu1 %vm1199_vm8, %v849_v8 }
 0x422   : > { %v1194_v35 = vmul.f32 %v2381_v10, %v2373_v59  ;;  %2166 = vmatprep.mubr.msk.f32.mxu1 %vm2643_vm1, %v2642_v19  ;;  %2177 = vmatprep.mubr.msk.f32.mxu0 (!%p2030_p12), %vm2646_vm11, %v2647_v36  ;;  %v2383_v53 = vpop.eup (!%p2030_p12), %2382  ;;  %v1687_v59 = vld [vmem:[#allocation12 + $0x38] sm:$0xff] (!%p2030_p12) }
 0x423   : > { %2237 = vmatprep.subr.bf16.mxu1 (!%p2030_p12), %v2645_v32  ;;  %2233 = vmatpush3.bf16.msra.mxu0 (!%p2030_p12), %v2232_v33  ;;  %v2247_v60 = vpack.c.bf16 (!%p2030_p12), %v1687_v59, %v1686_v58 }
 0x424   : > { %2167 = vmatmul.mubr.msk.f32.vlgmr.msra.gmra.mrb[10].mxu1 %vm1195_vm10, %v1194_v35  ;;  %2234 = vmatprep.subr.bf16.mxu0 (!%p2030_p12), %v2645_v32 }
 0x425   : > { %2188 = vmatprep.mubr.msk.f32.mxu1 (!%p2030_p12), %vm2646_vm11, %v2647_v36  ;;  %2239 = vmatpush3.bf16.msra.mxu1 (!%p2030_p12), %v2238_v40 }
 0x426   : > { %2240 = vmatprep.subr.bf16.mxu1 (!%p2030_p12), %v2645_v32 }
 0x427   : > { %2236 = vmatpush3.bf16.msra.mxu0 (!%p2030_p12), %v2235_v39 }
 0x428   : > { %2243 = vmatprep.subr.bf16.mxu0 (!%p2030_p12), %v2645_v32 }
 0x429   : > { %2242 = vmatpush3.bf16.msra.mxu1 (!%p2030_p12), %v2241_v44 }
 0x42a   : > { %2249 = vmatprep.subr.bf16.mxu1 (!%p2030_p12), %v2645_v32 }
 0x4ef   : > { %v1268_v11 = vpop.f32.mrb[6].mxu0 }
 0x4f0   : > { %v2153_v12 = vpop.f32.mrb[7].mxu0  ;;  %v1498_v14 = vsel %vm525_vm4, %v1268_v11, 0.0  ;;  %v2036_v11 = vld [vmem:[%s3177_s16 + $0x2] ss:$0 sm:$0xff] (!%p2030_p12) }
 0x4f3   : > { %v1343_v13 = vpop.f32.mrb[8].mxu1 }
 0x4f4   : > { %v1499_v15 = vsel %vm525_vm4, %v1343_v13, 0.0  ;;  %v1418_v16 = vpop.f32.mrb[8].mxu0  ;;  %v2158_v17 = vpop.f32.mrb[9].mxu1 }
 0x4f5   : > { %v1500_v18 = vadd.f32 %v1499_v15, %v1498_v14  ;;  %v2163_v20 = vpop.f32.mrb[9].mxu0  ;;  %v1501_v21 = vsel %vm525_vm4, %v1418_v16, 0.0 }
 0x4f7   : > { %v1502_v22 = vadd.f32 %v1501_v21, %v1500_v18  ;;  %v1493_v23 = vpop.f32.mrb[10].mxu1  ;;  %1510 = sbr.rel (%p2030_p12) target bundleno = 2148 (0x864), region = 88 }
 0x4f8   : > { %v1503_v19 = vsel %vm525_vm4, %v1493_v23, 0.0  ;;  %v2168_v25 = vpop.f32.mrb[11].mxu1 }
 0x4f9   : > { %v1504_v26 = vadd.f32 %v1503_v19, %v1502_v22 }
 0x4fb   : > { %v1505_v27 = vadd.f32 %v1504_v26, %v1497_v24 }
 0x4fd   : > { %1506 = vst.msk [vmem:[#allocation2] sm:$0x3] %vm525_vm4, %v1505_v27 }
 0x504   : > { %v1511_v41 = vld [vmem:[#allocation2] sm:$0x3] }
 0x505   : > { %2178 = vmatmul.mubr.msk.f32.vlgmr.msra.gmra.mrb[0].mxu0 %vm565_vm7, %v1511_v41 }
 0x506   : > { %2199 = vmatprep.mubr.msk.f32.mxu0 %vm2646_vm11, %v2647_v36  ;;  %2245 = vmatpush3.bf16.msra.mxu0 %v2244_v47 }
 0x507   : > { %2246 = vmatprep.subr.bf16.mxu0 %v2645_v32 }
 0x50a   : > { %2248 = vmatpush3.bf16.msra.mxu0 %v2247_v60 }
 0x5d8   : > { %v1593_v54 = vpop.f32.mrb[0].mxu0 }
 0x5d9   : > { %v1594_v55 = vadd.f32 %v1593_v54, %v1522_v52  ;;  %v2179_v56 = vpop.f32.mrb[1].mxu0 }
 0x5db   : > { %v1599_v57 = vmul.f32 %v2383_v53, %v1594_v55 }
 0x5dd   : > { %2189 = vmatmul.mubr.msk.f32.vlgmr.msra.gmra.mrb[0].mxu1 %vm565_vm7, %v1599_v57 }
 0x5de   : > { %2210 = vmatprep.mubr.msk.f32.mxu1 %vm2646_vm11, %v2647_v36  ;;  %2251 = vmatpush3.bf16.msra.mxu1 %v2250_v63 }
 0x5df   : > { %2252 = vmatprep.subr.bf16.mxu1 %v2645_v32 }
 0x5e2   : > { %2254 = vmatpush3.bf16.msra.mxu1 %v2253_v6 }
 0x6b0   : > { %v1678_v0 = vpop.f32.mrb[0].mxu1 }
 0x6b1   : > { %v1679_v1 = vadd.f32 %v2032_v30, %v1678_v0  ;;  %v2190_v2 = vpop.f32.mrb[1].mxu1 }
 0x6b3   : > { %v1682_v3 = vmax.f32 %v1679_v1, 0.0  ;;  %1851 = vst.msk [vmem:[#allocation14] sm:$0x3] %vm525_vm4, %v1679_v1 }
 0x6b5   : > { %2200 = vmatmul.mubr.msk.f32.vlgmr.msra.gmra.mrb[2].mxu0 %vm565_vm7, %v1682_v3 }
 0x788   : > { %v1762_v8 = vpop.f32.mrb[2].mxu0 }
 0x789   : > { %v1763_v9 = vadd.f32 %v2034_v7, %v1762_v8  ;;  %v2201_v10 = vpop.f32.mrb[3].mxu0 }
 0x78b   : > { %v1766_v35 = vmax.f32 %v1763_v9, 0.0  ;;  %1852 = vst.msk [vmem:[#allocation14 + $0x2] sm:$0x3] %vm525_vm4, %v1763_v9 }
 0x78d   : > { %2211 = vmatmul.mubr.msk.f32.vlgmr.msra.gmra.mrb[2].mxu1 %vm565_vm7, %v1766_v35 }
 0x860   : > { %v1846_v12 = vpop.f32.mrb[2].mxu1 }
 0x861   : > { %v1847_v13 = vadd.f32 %v2036_v11, %v1846_v12  ;;  %v2212_v14 = vpop.f32.mrb[3].mxu1 }
 0x863   : > { %1850 = vst.msk [vmem:[#allocation13] sm:$0x3] %vm525_vm4, %v1847_v13  ;;  %1853 = vst.msk [vmem:[#allocation14 + $0x4] sm:$0x3] %vm525_vm4, %v1847_v13 }
 0x864 PF: > { %p2307_p13 = scmp.eq.s32.totalorder %s2731_s21, 1  ;;  %s2648_s12 = smov [#allocation13]  }
 0x865   : > { %s1861_s30 = sshll.u32 %s2648_s12, 4  ;;  %s2649_s28 = smov [#allocation14]   ;;  %s1862_s30 = int_to_ptr.vmem [resolvable:$true] %s1861_s30 }
 0x866   : > { %s1871_s9 = sshll.u32 %s2649_s28, 4  ;;  %s2526_s26 = scalar_lea.vmem %s1862_s30, 32  ;;  %s1872_s9 = int_to_ptr.vmem [resolvable:$true] %s1871_s9 }
 0x867   : > { %p2527_p0 = scmp.ne.s32.totalorder %s1862_s30, %s2526_s26  ;;  %p2533_p11 = scmp.lt.s32.totalorder %s1862_s30, %s1862_s30 }
 0x868   : > { %p2534_p2 = scmp.lt.s32.totalorder %s2526_s26, %s2526_s26 }
 0x869   : > { %p2528_p3 = pnand %p2527_p0, %p2307_p13 }
 0x86a   : > { %p2535_p7 = por %p2534_p2, %p2533_p11 }
 0x86b   : > { %p2529_p9 = pneg %p2528_p3 }
 0x86d   : > { %p2536_p1 = pnand %p2535_p7, %p2529_p9 }
 0x86f   : > { %2539 = shalt.err (!%p2536_p1)
}
 0x870   : > { %s3178_s25 = sld [smem:[#allocation22_spill]] }
 0x876   : > { %s2540_s13 = scalar_lea.hbm %s3178_s25, 32 }
 0x877   : > { %p2541_p8 = scmp.ne.s32.totalorder %s3178_s25, %s2540_s13  ;;  %p2546_p5 = scmp.lt.u32.totalorder %s2540_s13, %s3178_s25 }
 0x879   : > { %p2542_p4 = pnand %p2541_p8, %p2307_p13 }
 0x87b   : > { %p2543_p10 = pneg %p2542_p4 }
 0x87d   : > { %p2548_p6 = pnand %p2546_p5, %p2543_p10 }
 0x87f   : > { %2551 = shalt.err (!%p2548_p6)
}
 0x880   : > { %2274 = dma.vmem_to_hbm [thread:$0]  (%p2307_p13), %s1862_s30, 32, %s3178_s25, [#allocation6]  }
 0x881   : > { %s2552_s29 = scalar_lea.vmem %s1872_s9, 96  ;;  %p2559_p9 = scmp.lt.s32.totalorder %s1872_s9, %s1872_s9 }
 0x882   : > { %p2553_p12 = scmp.ne.s32.totalorder %s1872_s9, %s2552_s29  ;;  %p2560_p11 = scmp.lt.s32.totalorder %s2552_s29, %s2552_s29 }
 0x884   : > { %p2554_p0 = pnand %p2553_p12, %p2307_p13  ;;  %p2561_p2 = por %p2560_p11, %p2559_p9 }
 0x886   : > { %p2555_p3 = pneg %p2554_p0 }
 0x888   : > { %p2562_p7 = pnand %p2561_p2, %p2555_p3 }
 0x88a   : > { %2565 = shalt.err (!%p2562_p7)
}
 0x88b   : > { %s3179_s26 = sld [smem:[#allocation23_spill]] }
 0x891   : > { %s2566_s10 = scalar_lea.hbm %s3179_s26, 96 }
 0x892   : > { %p2567_p1 = scmp.ne.s32.totalorder %s3179_s26, %s2566_s10  ;;  %p2572_p10 = scmp.lt.u32.totalorder %s2566_s10, %s3179_s26 }
 0x894   : > { %p2568_p8 = pnand %p2567_p1, %p2307_p13 }
 0x896   : > { %p2569_p4 = pneg %p2568_p8 }
 0x898   : > { %p2574_p5 = pnand %p2572_p10, %p2569_p4 }
 0x89a   : > { %2577 = shalt.err (!%p2574_p5)
}
 0x89b   : > { %s2650_s11 = smov 32   ;;  %s2651_s20 = smov 2  }
 0x89c   : > { %2276 = dma.vmem_to_hbm [thread:$0]  (%p2307_p13), %s1872_s9, 96, %s3179_s26, [#allocation15], %s2650_s11, %s2650_s11, %s2651_s20  }
 0x89d   : > { %2607 = dma.done.wait (%p2307_p13), [#allocation6], 32  }
 0x89e   : > { %2609 = vsyncadd (%p2307_p13), [#allocation6], 4294967264 }
 0x89f   : > { %2611 = dma.done.wait (%p2307_p13), [#allocation15], 96  }
 0x8a0   : > { %2613 = vsyncadd (%p2307_p13), [#allocation15], 4294967200 }
 0x8a1 PF: > { %s3180_s27 = smov %s2864_s17  ;;  %p26_p6 = scmp.ge.s32.totalorder %s2864_s17, 4  }
 0x8a2   : > { %s3181_s17 = smov %s2620_s18  ;;  %s3182_s18 = smov %s2624_s19 }
 0x8a3   : > { %s3183_s19 = smov %s2875_s15  ;;  %s3184_s20 = smov %s3180_s27 }
 0x8a4   :  { %28 = sbr.rel (!%p26_p6) target bundleno = 11 (0xb), region = 134 }
 0x8ab   :  { %1891 = vsyncpa [#allocation5], 1 }
 0x8ac   :  { %1893 = vsyncpa [#allocation5 + $0x1], 1 }
 0x8ad   :  { %1894 = vsyncpa [#allocation8], 1 }
 0x8ae   :  { %1895 = vsyncpa [#allocation11], 1 }
 0x8af   :  { %1896 = vsyncpa [#allocation6], 1 }
 0x8b0   :  { %1898 = vsyncpa [#allocation6 + $0x1], 1 }
 0x8b1   :  { %1899 = vsyncpa [#allocation15], 1 }

</bundles_post_ra>
